<compile_context>
chip_gen: v7x
topology: tpu7x:2x2x1
jax: 0.10.0
libtpu: 0.0.40
codegen_flags: <defaults>
</compile_context>

<pallas_src>
import functools

import jax
import jax.numpy as jnp
from jax.experimental import pallas as pl
from jax.experimental.pallas import tpu as pltpu


def _round_up(x: int, m: int) -> int:
    return ((x + m - 1) // m) * m


def _fused_linear_kernel(x_ref, w_ref, b_ref, o_ref):
    # (TB, D_pad) bf16 @ (D_pad, O) bf16 -> f32 accumulation on the MXU, f32 bias add.
    y = jnp.dot(x_ref[...], w_ref[...], preferred_element_type=jnp.float32)
    o_ref[...] = (y + b_ref[...]).astype(o_ref.dtype)


def prepare_fused_params(w1, b1, w2, b2):
    """One-time weight prep (outside the hot path).

    w1 : (hidden, input)   PyTorch nn.Linear weight layout
    b1 : (hidden,)
    w2 : (output, hidden)
    b2 : (output,)

    Returns (w_fused (D_pad, O) bf16, b_fused (1, O) f32, D, O).

    NOTE: the fusion (x @ W1^T + b1) @ W2^T + b2 == x @ (W1^T W2^T) + (b1 W2^T + b2)
    is exact ONLY because there is no nonlinearity between the two Linears.  If an
    activation is ever inserted in the model, this prep (and kernel) must change.
    """
    D = w1.shape[1]
    O = w2.shape[0]
    D_pad = _round_up(D, 128)

    w1_t = jnp.transpose(w1).astype(jnp.float32)            # (D, H)
    w2_t = jnp.transpose(w2).astype(jnp.float32)            # (H, O)
    w_fused = jnp.dot(w1_t, w2_t)                           # (D, O), fused in f32
    b_fused = (jnp.dot(b1.astype(jnp.float32), w2_t) + b2).reshape(1, O)  # (1, O) f32

    # Pad the contraction dim with zero rows, then store bf16 for the kernel.
    w_fused = jnp.pad(w_fused, ((0, D_pad - D), (0, 0))).astype(jnp.bfloat16)
    return w_fused, b_fused.astype(jnp.float32), D, O


@functools.partial(jax.jit, static_argnames=("in_features",))
def fashion_mnist_model_v0(x_nchw, w_fused, b_fused, *, in_features):
    """Forward pass matching nn.Sequential(Flatten, Linear, Linear).

    x_nchw  : (B, C, H, W) float32 with C*H*W == in_features
    w_fused : (D_pad, O) bf16 from prepare_fused_params
    b_fused : (1, O) f32
    Returns (B, O) float32 logits.
    """
    B = x_nchw.shape[0]
    D_pad, O = w_fused.shape

    # nn.Flatten() + one-time bf16 cast (halves the dominant HBM read of the kernel;
    # XLA fuses reshape+convert into one cheap elementwise pass).
    x_flat = x_nchw.reshape(B, -1).astype(jnp.bfloat16)
    assert x_flat.shape[1] == in_features
    if D_pad != in_features:
        # Zero-pad the contraction dim to match the padded fused weight.
        x_flat = jnp.pad(x_flat, ((0, 0), (0, D_pad - in_features)))

    # Batch tile.  No wrapper-side row padding: Pallas handles the ragged tail block
    # (tail rows are never written back).  For B > 16, TB ~ ceil(B/2) (capped at 2048,
    # multiple of 16 for bf16) so the "parallel" grid has >= 2 steps -> both v7x TCs.
    if B <= 16:
        TB = B                                              # full-dim block: always legal
    else:
        TB = min(2048, _round_up(pl.cdiv(B, 2), 16))
    grid = pl.cdiv(B, TB)

    cost = pl.CostEstimate(
        flops=2 * B * D_pad * O,
        transcendentals=0,
        bytes_accessed=B * D_pad * 2 + D_pad * O * 2 + O * 4 + B * O * 4,
    )

    out = pl.pallas_call(
        _fused_linear_kernel,
        out_shape=jax.ShapeDtypeStruct((B, O), jnp.float32),
        grid_spec=pl.GridSpec(
            grid=(grid,),
            in_specs=[
                pl.BlockSpec((TB, D_pad), lambda i: (i, 0)),    # x tile, double-buffered
                pl.BlockSpec((D_pad, O), lambda i: (0, 0)),     # fused weight, VMEM-resident
                pl.BlockSpec((1, O), lambda i: (0, 0)),         # fused bias (f32), VMEM-resident
            ],
            # 10-wide output block: last dim equals the full array dim, so no lane
            # padding is written back to HBM and no final slice is needed.
            out_specs=pl.BlockSpec((TB, O), lambda i: (i, 0)),
        ),
        compiler_params=pltpu.CompilerParams(
            dimension_semantics=("parallel",)),
        cost_estimate=cost,
    )(x_flat, w_fused, b_fused)

    return out


def _init_linear(key, out_features, in_features):
    """Deterministic PyTorch-style nn.Linear init: U(-1/sqrt(fan_in), +1/sqrt(fan_in))."""
    kw, kb = jax.random.split(key)
    bound = 1.0 / (in_features ** 0.5)
    w = jax.random.uniform(kw, (out_features, in_features),
                           minval=-bound, maxval=bound, dtype=jnp.float32)
    b = jax.random.uniform(kb, (out_features,),
                           minval=-bound, maxval=bound, dtype=jnp.float32)
    return w, b


if __name__ == "__main__":
    # Small shapes consistent with the module: B=8, image (1, 16, 16) -> input_shape=256,
    # hidden_units=32, output_shape=10.
    B, C, Himg, Wimg = 8, 1, 16, 16
    input_shape = C * Himg * Wimg
    hidden_units = 32
    output_shape = 10

    key = jax.random.PRNGKey(0)
    kx, k1, k2 = jax.random.split(key, 3)

    x = jax.random.normal(kx, (B, C, Himg, Wimg), dtype=jnp.float32)
    w1, b1 = _init_linear(k1, hidden_units, input_shape)
    w2, b2 = _init_linear(k2, output_shape, hidden_units)

    # One-time weight prep (hoisted out of the per-call path).
    w_fused, b_fused, D, O = prepare_fused_params(w1, b1, w2, b2)

    out = fashion_mnist_model_v0(x, w_fused, b_fused, in_features=D)
    out = jax.block_until_ready(out)

    # Pure-JAX (unfused, f32) reference for correctness.
    x_flat = x.reshape(B, -1)
    ref = (x_flat @ w1.T + b1) @ w2.T + b2
    assert out.shape == (B, output_shape)
    assert out.dtype == jnp.float32
    # bf16 inputs with f32 accumulation -> slightly looser tolerance than pure f32.
    max_diff = float(jnp.max(jnp.abs(out - ref)))
    assert jnp.allclose(out, ref, atol=3e-2, rtol=3e-2), f"mismatch vs reference (max abs diff {max_diff})"

    print("KERNEL_OK")
</pallas_src>

<mosaic_0001>
module attributes {stable_mosaic.version = 11 : i64} {
  func.func @_fused_linear_kernel(%arg0: i32, %arg1: memref<8x256xbf16, #tpu.memory_space<vmem>>, %arg2: memref<256x10xbf16, #tpu.memory_space<vmem>>, %arg3: memref<1x10xf32, #tpu.memory_space<vmem>>, %arg4: memref<8x10xf32, #tpu.memory_space<vmem>>) attributes {dimension_semantics = [#tpu.dimension_semantics<parallel>], iteration_bounds = array<i64: 1>, scalar_prefetch = 0 : i64, scratch_operands = 0 : i64, tpu.core_type = #tpu.core_type<tc>, window_params = [{transform_indices = @transform_0, window_bounds = array<i64: 8, 256>}, {pipeline_mode = #tpu.pipeline_mode<synchronous>, transform_indices = @transform_1, window_bounds = array<i64: 256, 10>}, {pipeline_mode = #tpu.pipeline_mode<synchronous>, transform_indices = @transform_2, window_bounds = array<i64: 1, 10>}, {transform_indices = @transform_3, window_bounds = array<i64: 8, 10>}]} {
    %c0 = arith.constant 0 : index
    %c0_0 = arith.constant 0 : index
    %0 = vector.load %arg1[%c0, %c0_0] : memref<8x256xbf16, #tpu.memory_space<vmem>>, vector<8x256xbf16>
    %c0_1 = arith.constant 0 : index
    %c0_2 = arith.constant 0 : index
    %1 = vector.load %arg2[%c0_1, %c0_2] : memref<256x10xbf16, #tpu.memory_space<vmem>>, vector<256x10xbf16>
    %cst = arith.constant dense<0.000000e+00> : vector<8x10xf32>
    %2 = tpu.matmul %0, %1, %cst {dimension_numbers = #tpu.dot_dimension_numbers<[1], [0], [0], [1], [0, 0, 1, 1], [], []>} : vector<8x256xbf16>, vector<256x10xbf16>, vector<8x10xf32> -> vector<8x10xf32>
    %c0_3 = arith.constant 0 : index
    %c0_4 = arith.constant 0 : index
    %3 = vector.load %arg3[%c0_3, %c0_4] : memref<1x10xf32, #tpu.memory_space<vmem>>, vector<1x10xf32>
    %4 = vector.broadcast %3 : vector<1x10xf32> to vector<8x10xf32>
    %5 = arith.addf %2, %4 : vector<8x10xf32>
    %c0_5 = arith.constant 0 : index
    %c0_6 = arith.constant 0 : index
    %6 = vector.load %arg4[%c0_5, %c0_6] : memref<8x10xf32, #tpu.memory_space<vmem>>, vector<8x10xf32>
    tpu.vector_store %arg4[%c0_5, %c0_6], %5 {strides = array<i32>} : memref<8x10xf32, #tpu.memory_space<vmem>>, vector<8x10xf32>,
    return
  }
  func.func @transform_0(%arg0: i32) -> (i32, i32) {
    %c0_i32 = arith.constant 0 : i32
    %c0_i32_0 = arith.constant 0 : i32
    return %arg0, %c0_i32 : i32, i32
  }
  func.func @transform_1(%arg0: i32) -> (i32, i32) {
    %c0_i32 = arith.constant 0 : i32
    %c0_i32_0 = arith.constant 0 : i32
    %c0_i32_1 = arith.constant 0 : i32
    return %c0_i32, %c0_i32_0 : i32, i32
  }
  func.func @transform_2(%arg0: i32) -> (i32, i32) {
    %c0_i32 = arith.constant 0 : i32
    %c0_i32_0 = arith.constant 0 : i32
    %c0_i32_1 = arith.constant 0 : i32
    return %c0_i32, %c0_i32_0 : i32, i32
  }
  func.func @transform_3(%arg0: i32) -> (i32, i32) {
    %c0_i32 = arith.constant 0 : i32
    %c0_i32_0 = arith.constant 0 : i32
    return %arg0, %c0_i32 : i32, i32
  }
}

</mosaic_0001>

<bundles_post_ra>
// kernel: fashion_mnist_model_v0.1
= control target key start
LH: loop header
LB: loop body
LE: loop exit
PB: predicated region body
PF: predicated region fallthrough
CT: control target
= control target key end

     0   :  { %s386_s0 = inlined_call_operand.vmem [shape: bf16[8,256], index: 0, kind: input, shape index: {}]   ;;  %s387_s1 = inlined_call_operand.vmem [shape: bf16[256,10], index: 1, kind: input, shape index: {}]   ;;  %s388_s2 = inlined_call_operand.vmem [shape: f32[1,10], index: 2, kind: input, shape index: {}]   ;;  %s389_s3 = inlined_call_operand.hbm [shape: f32[8,10], index: 3, kind: output, shape index: {}]  }
   0x1   :  { %v257_v0 = vld [vmem:[%s387_s1 + $0x40] sm:$0xff]   ;;  %v259_v2 = vld [vmem:[%s387_s1 + $0x48] sm:$0xff]   ;;  %v261_v4 = vld [vmem:[%s387_s1 + $0x50] sm:$0xff]  }
   0x2   :  { %v258_v1 = vld [vmem:[%s387_s1] sm:$0xff]   ;;  %234 = vmatprep.subr.bf16.mxu0 %v257_v0  ;;  %v260_v3 = vld [vmem:[%s387_s1 + $0x8] sm:$0xff]   ;;  %v262_v5 = vld [vmem:[%s387_s1 + $0x10] sm:$0xff]  }
   0x3   :  { %235 = vmatpush3.bf16.msra.mxu0 %v258_v1  ;;  %v263_v6 = vld [vmem:[%s387_s1 + $0x58] sm:$0xff]   ;;  %v265_v8 = vld [vmem:[%s387_s1 + $0x60] sm:$0xff]   ;;  %v267_v10 = vld [vmem:[%s387_s1 + $0x68] sm:$0xff]  }
   0x4   :  { %236 = vmatprep.subr.bf16.mxu0 %v259_v2  ;;  %v264_v7 = vld [vmem:[%s387_s1 + $0x18] sm:$0xff]   ;;  %v266_v9 = vld [vmem:[%s387_s1 + $0x20] sm:$0xff]  }
   0x5   :  { %v16_v11 = vld [vmem:[%s386_s0] sm:$0xff] }
   0x7   :  { %237 = vmatpush3.bf16.msra.mxu0 %v260_v3 }
   0x8   :  { %238 = vmatprep.subr.bf16.mxu0 %v261_v4 }
   0xb   :  { %239 = vmatpush3.bf16.msra.mxu0 %v262_v5 }
   0xc   :  { %240 = vmatprep.subr.bf16.mxu0 %v263_v6 }
   0xf   :  { %241 = vmatpush3.bf16.msra.mxu0 %v264_v7 }
  0x10   :  { %242 = vmatprep.subr.bf16.mxu0 %v265_v8 }
  0x11   :  { %8 = vsyncpa [#allocation3], 0  ;;  %v217_v12 = vcombine.high %v16_v11, %v16_v11  ;;  %v268_v13 = vld [vmem:[%s387_s1 + $0x28] sm:$0xff]   ;;  %v269_v14 = vld [vmem:[%s387_s1 + $0x70] sm:$0xff]   ;;  %v216_v18 = vcombine.low %v16_v11, %v16_v11  ;;  %s299_s20 = smov [#allocation2]   ;;  %vm199_vm0 = vcmask 80896  }
  0x12   :  { %v270_v15 = vld [vmem:[%s387_s1 + $0x30] sm:$0xff]   ;;  %v271_v16 = vld [vmem:[%s387_s1 + $0x78] sm:$0xff]   ;;  %v215_v20 = vld [vmem:[%s388_s2] ss:$0 sm:$0xff]  ;;  %s207_s21 = sshll.u32 %s299_s20, 4  ;;  %s208_s21 = int_to_ptr.vmem [resolvable:$true] %s207_s21 }
  0x13   :  { %243 = vmatpush3.bf16.msra.mxu0 %v266_v9  ;;  %191 = vmatprep.mubr.bf16.mxu0 %v217_v12  ;;  %v272_v17 = vld [vmem:[%s387_s1 + $0x38] sm:$0xff]   ;;  %s275_s1 = scalar_lea.vmem %s208_s21, 128  ;;  %p280_p1 = scmp.lt.s32.totalorder %s208_s21, %s208_s21 }
  0x14   :  { %244 = vmatprep.subr.bf16.mxu0 %v267_v10  ;;  %p276_p0 = scmp.ne.s32.totalorder %s208_s21, %s275_s1  ;;  %p281_p2 = scmp.lt.s32.totalorder %s275_s1, %s275_s1 }
  0x16   :  { %p282_p3 = por %p281_p2, %p280_p1 }
  0x17   :  { %245 = vmatpush3.bf16.msra.mxu0 %v268_v13 }
  0x18   :  { %246 = vmatprep.subr.bf16.mxu0 %v269_v14  ;;  %p283_p4 = pnand %p282_p3, %p276_p0 }
  0x1b   :  { %247 = vmatpush3.bf16.msra.mxu0 %v270_v15 }
  0x1c   :  { %248 = vmatprep.subr.bf16.mxu0 %v271_v16 }
  0x1f   :  { %249 = vmatpush3.bf16.msra.mxu0 %v272_v17 }
  0x22   :  { %192 = vmatmul.mubr.bf16.vlgmr.msra.gmra.mrb[0].mxu0 %v216_v18 }
  0xf5   :  { %v250_v19 = vpop.f32.mrb[0].mxu0 }
  0xf6   :  { %v251_v21 = vpop.f32.mrb[1].mxu0 }
  0xf7   :  { %v252_v22 = vadd.f32 %v251_v21, %v250_v19  ;;  %v253_v23 = vpop.f32.mrb[2].mxu0 }
  0xf8   :  { %v254_v24 = vpop.f32.mrb[3].mxu0 }
  0xf9   :  { %v194_v25 = vadd.f32 %v252_v22, %v215_v20 }
  0xfb   :  { %200 = vst.msk [vmem:[#allocation2] sm:$0xff] %vm199_vm0, %v194_v25 }
  0xfc   :  { %286 = shalt.err (!%p283_p4)
}
  0xfd   :  { %s287_s2 = scalar_lea.hbm %s389_s3, 128 }
  0xfe   :  { %p288_p5 = scmp.ne.s32.totalorder %s389_s3, %s287_s2  ;;  %p291_p6 = scmp.lt.u32.totalorder %s287_s2, %s389_s3 }
 0x100   :  { %p293_p7 = pnand %p291_p6, %p288_p5 }
 0x102   :  { %296 = shalt.err (!%p293_p7)
}
 0x103   :  { %210 = dma.vmem_to_hbm [thread:$0]  %s208_s21, 128, %s389_s3, [#allocation3]  }
 0x104   :  { %297 = dma.done.wait [#allocation3], 128  }
 0x105   :  { %298 = vsyncadd [#allocation3], 4294967168 }
 0x106   :  { %214 = vsyncpa [#allocation3], 1 }

</bundles_post_ra>
